<compile_context>
chip_gen: v7x
topology: tpu7x:2x2x1
jax: 0.10.0
libtpu: 0.0.40
codegen_flags: <defaults>
</compile_context>

<pallas_src>
import functools

import jax
import jax.numpy as jnp
from jax.experimental import pallas as pl
from jax.experimental.pallas import tpu as pltpu


def _round_up(x, m):
    return ((x + m - 1) // m) * m


@functools.lru_cache(maxsize=1)
def _vmem_capacity_bytes():
    """Physical per-TensorCore VMEM (128 MiB on v5e/v6e, 64 MiB on v7x)."""
    try:
        return int(pltpu.get_tpu_info().vmem_capacity_bytes)
    except Exception:
        return 64 * 1024 * 1024  # conservative fallback (v7x-sized)


def _ffn_kernel(x_ref, w_up_ref, b_up_ref, w_down_ref, b_down_ref, o_ref,
                *scratch):
    # x_ref:      (tm, in_pad)     row tile (resident across the ff axis)
    # w_up_ref:   (in_pad, tf)     up-projection slice for this ff tile
    # b_up_ref:   (1, tf)
    # w_down_ref: (tf, in_pad)     down-projection slice for this ff tile
    # b_down_ref: (1, in_pad)
    # o_ref:      (tm, in_pad)     output tile (resident across the ff axis)
    # scratch:    () when the output is f32 (accumulate straight into o_ref),
    #             (f32 acc_ref,) when the output dtype is narrower.
    acc_ref = scratch[0] if scratch else o_ref
    j = pl.program_id(1)

    @pl.when(j == 0)
    def _():
        # Fold the down-projection bias into the accumulator init: removes the
        # zero-init pass and the separate bias-add pass at finalize.
        acc_ref[...] = jnp.broadcast_to(
            b_down_ref[...].astype(acc_ref.dtype), acc_ref.shape)

    # Up-projection for this ff slice; bias add + ReLU stay in f32 (VPU has no
    # bf16 path on v5e).
    h = jnp.dot(x_ref[...], w_up_ref[...], preferred_element_type=jnp.float32)
    h = jnp.maximum(h + b_up_ref[...].astype(jnp.float32), 0.0)

    # Partial down-projection for this ff slice, accumulated in f32.
    acc_ref[...] += jnp.dot(h.astype(w_down_ref.dtype), w_down_ref[...],
                            preferred_element_type=jnp.float32)

    if scratch:  # narrow output dtype: single cast on the last ff step
        @pl.when(j == pl.num_programs(1) - 1)
        def _():
            o_ref[...] = acc_ref[...].astype(o_ref.dtype)


@functools.partial(jax.jit, static_argnames=("tm", "tf"))
def ffn_pallas(x, w_up, b_up, w_down, b_down, *, tm=None, tf=512):
    """x: [batch, seq, in_dim] -> [batch, seq, in_dim].

    Works for any batch*seq / in_dim / ff_dim (zero-padding to MXU-friendly
    tiles is handled internally). Pass bf16 inputs/weights for best MXU
    throughput (strongly recommended on v5e); accumulation stays in f32.
    tm=None picks a generation-appropriate row tile automatically.
    """
    batch, seq, in_dim = x.shape
    ff_dim = w_up.shape[1]
    M = batch * seq

    x_isz = jnp.dtype(x.dtype).itemsize
    w_isz = jnp.dtype(w_up.dtype).itemsize
    out_dtype = x.dtype
    out_isz = x_isz
    needs_acc = out_dtype != jnp.float32  # separate f32 accumulator scratch

    # Lane padding: 128 always; 256 for large feature dims so both matmuls'
    # K/N align with the 256x256 MXU on v6e/v7x (harmless on v5e's 128x128).
    lane_mult = 256 if in_dim >= 1024 else 128
    in_pad = _round_up(in_dim, lane_mult)

    # ff tile: target tf (multiple of 128); pad ff UP to a multiple of it
    # instead of shrinking the tile (avoids degenerate 128-wide ff tiles).
    tf_eff = max(128, min(_round_up(int(tf), 128), _round_up(ff_dim, 128)))

    # --- VMEM budget (per TPU generation) --------------------------------
    vmem_cap = _vmem_capacity_bytes()
    # Leave headroom for Mosaic internal scratch / semaphores / control:
    # ~105 MiB on 128 MiB parts, ~52 MiB on v7x's 64 MiB.
    vmem_budget = min(int(vmem_cap * 0.82), vmem_cap - 8 * 1024 * 1024)

    def _fixed_bytes(t):  # tm-independent VMEM: weights + biases, x2 buffered
        return (2 * in_pad * t * w_isz          # W_up tiles
                + 2 * t * in_pad * w_isz        # W_down tiles
                + 2 * 16 * (t + in_pad) * w_isz)  # biases (sublane padded)

    fixed = _fixed_bytes(tf_eff)
    while tf_eff > 128 and fixed > vmem_budget // 2:  # huge in_dim safety
        tf_eff = max(128, (tf_eff // 2 // 128) * 128)
        fixed = _fixed_bytes(tf_eff)
    ff_pad = _round_up(ff_dim, tf_eff)

    # Per-row VMEM: double-buffered x + out tiles (+ f32 accumulator).
    per_row = in_pad * (2 * x_isz + 2 * out_isz + (4 if needs_acc else 0))

    # Row-tile target: big enough to be MXU-bound given each generation's
    # HBM-bandwidth ridge; 64 MiB parts (v7x) have ~2.3x the bandwidth so a
    # smaller tile already crosses the ridge.
    tm_target = 1024 if vmem_cap > 96 * 1024 * 1024 else 512
    if tm is not None:  # defensive: keep user tiles sublane-aligned
        tm_target = max(16, (int(tm) // 16) * 16)

    tm_fit = max(16, ((vmem_budget - fixed) // per_row) // 16 * 16)
    m_ceil = _round_up(M, 16)
    tm_eff = min(tm_target, tm_fit, m_ceil)
    # Megacore: if a single tile would cover all rows but M is large, split so
    # the "parallel" M axis gives both TensorCores work.
    if tm_eff >= m_ceil and M >= 512:
        tm_eff = min(_round_up((M + 1) // 2, 16), tm_fit)
    tm_eff = max(16, (tm_eff // 16) * 16)
    M_pad = _round_up(M, tm_eff)

    # --- Padding (numerically inert, see header) --------------------------
    x2d = x.reshape(M, in_dim)
    if (M_pad, in_pad) != (M, in_dim):
        x2d = jnp.pad(x2d, ((0, M_pad - M), (0, in_pad - in_dim)))
    w_up_p = w_up
    if (in_pad, ff_pad) != (in_dim, ff_dim):
        w_up_p = jnp.pad(w_up, ((0, in_pad - in_dim), (0, ff_pad - ff_dim)))
    w_down_p = w_down
    if (ff_pad, in_pad) != (ff_dim, in_dim):
        w_down_p = jnp.pad(w_down, ((0, ff_pad - ff_dim), (0, in_pad - in_dim)))
    b_up2 = jnp.pad(b_up, (0, ff_pad - ff_dim)).reshape(1, ff_pad)
    b_down2 = jnp.pad(b_down, (0, in_pad - in_dim)).reshape(1, in_pad)

    grid_m = M_pad // tm_eff
    grid = (grid_m, ff_pad // tf_eff)

    # VMEM request sized from the actual tiles (+25% slack), within budget.
    vmem_need = (2 * tm_eff * in_pad * x_isz            # x tiles
                 + 2 * tm_eff * in_pad * out_isz        # out tiles
                 + (tm_eff * in_pad * 4 if needs_acc else 0)
                 + fixed)
    vmem_limit = int(min(max(vmem_need * 5 // 4, 32 * 1024 * 1024),
                         vmem_budget))

    w_bytes = ((w_up_p.size + w_down_p.size) * w_isz
               + b_up2.size * jnp.dtype(b_up.dtype).itemsize
               + b_down2.size * jnp.dtype(b_down.dtype).itemsize)
    cost = pl.CostEstimate(
        flops=4 * M_pad * in_pad * ff_pad,          # two matmuls, 2 flops/MAC
        transcendentals=0,
        # Weights are re-streamed once per M tile, not once total.
        bytes_accessed=int(x2d.size * x_isz + grid_m * w_bytes
                           + M_pad * in_pad * out_isz),
    )

    scratch_shapes = ([pltpu.VMEM((tm_eff, in_pad), jnp.float32)]
                      if needs_acc else [])

    out2d = pl.pallas_call(
        _ffn_kernel,
        out_shape=jax.ShapeDtypeStruct((M_pad, in_pad), out_dtype),
        grid_spec=pltpu.PrefetchScalarGridSpec(
            num_scalar_prefetch=0,
            grid=grid,
            in_specs=[
                pl.BlockSpec((tm_eff, in_pad), lambda i, j: (i, 0)),   # x
                pl.BlockSpec((in_pad, tf_eff), lambda i, j: (0, j)),   # W_up
                pl.BlockSpec((1, tf_eff), lambda i, j: (0, j)),        # b_up
                pl.BlockSpec((tf_eff, in_pad), lambda i, j: (j, 0)),   # W_down
                pl.BlockSpec((1, in_pad), lambda i, j: (0, 0)),        # b_down
            ],
            out_specs=pl.BlockSpec((tm_eff, in_pad), lambda i, j: (i, 0)),
            scratch_shapes=scratch_shapes,
        ),
        compiler_params=pltpu.CompilerParams(
            dimension_semantics=("parallel", "arbitrary"),
            vmem_limit_bytes=vmem_limit,
        ),
        cost_estimate=cost,
    )(x2d, w_up_p, b_up2, w_down_p, b_down2)

    return out2d[:M, :in_dim].reshape(batch, seq, in_dim)


def init_ffn_params(key, in_dim, ff_dim, dtype=jnp.float32):
    """Deterministic init mirroring torch.nn.Linear's U(-1/sqrt(fan_in), +)."""
    k1, k2, k3, k4 = jax.random.split(key, 4)
    bound_up = 1.0 / jnp.sqrt(in_dim)
    bound_dn = 1.0 / jnp.sqrt(ff_dim)
    # Stored transposed vs torch ([out, in] -> [in, out]) for row-major matmul.
    w_up = jax.random.uniform(k1, (in_dim, ff_dim), dtype, -bound_up, bound_up)
    b_up = jax.random.uniform(k2, (ff_dim,), dtype, -bound_up, bound_up)
    w_down = jax.random.uniform(k3, (ff_dim, in_dim), dtype, -bound_dn, bound_dn)
    b_down = jax.random.uniform(k4, (in_dim,), dtype, -bound_dn, bound_dn)
    return w_up, b_up, w_down, b_down


def ffn_reference(x, w_up, b_up, w_down, b_down):
    x32 = x.astype(jnp.float32)
    h = jnp.maximum(
        jnp.einsum("bsd,df->bsf", x32, w_up.astype(jnp.float32))
        + b_up.astype(jnp.float32), 0.0)
    return (jnp.einsum("bsf,fd->bsd", h, w_down.astype(jnp.float32))
            + b_down.astype(jnp.float32))


if __name__ == "__main__":
    batch, seq, in_dim, ff_dim = 2, 8, 32, 64

    key = jax.random.PRNGKey(0)
    kx, kp = jax.random.split(key)
    x = jax.random.normal(kx, (batch, seq, in_dim), jnp.float32)
    w_up, b_up, w_down, b_down = init_ffn_params(kp, in_dim, ff_dim)

    # f32 path (accumulates directly into the output tile, no scratch).
    out = ffn_pallas(x, w_up, b_up, w_down, b_down)
    out = jax.block_until_ready(out)
    ref = ffn_reference(x, w_up, b_up, w_down, b_down)
    assert out.shape == (batch, seq, in_dim)
    assert jnp.allclose(out, ref, atol=1e-5, rtol=1e-5), "f32 mismatch vs reference"

    # bf16 path (fast MXU path): f32 accumulation in a VMEM scratch inside the
    # kernel, wider tolerance for bf16 inputs.
    bf = jnp.bfloat16
    out_bf = ffn_pallas(x.astype(bf), w_up.astype(bf), b_up.astype(bf),
                        w_down.astype(bf), b_down.astype(bf))
    out_bf = jax.block_until_ready(out_bf)
    ref_bf = ffn_reference(x.astype(bf), w_up.astype(bf), b_up.astype(bf),
                           w_down.astype(bf), b_down.astype(bf))
    assert jnp.allclose(out_bf.astype(jnp.float32), ref_bf,
                        atol=5e-2, rtol=5e-2), "bf16 mismatch vs reference"

    print("KERNEL_OK")
</pallas_src>

<mosaic_0001>
module attributes {stable_mosaic.version = 11 : i64} {
  func.func @_ffn_kernel(%arg0: i32, %arg1: i32, %arg2: memref<16x128xf32, #tpu.memory_space<vmem>>, %arg3: memref<128x128xf32, #tpu.memory_space<vmem>>, %arg4: memref<1x128xf32, #tpu.memory_space<vmem>>, %arg5: memref<128x128xf32, #tpu.memory_space<vmem>>, %arg6: memref<1x128xf32, #tpu.memory_space<vmem>>, %arg7: memref<16x128xf32, #tpu.memory_space<vmem>>) attributes {dimension_semantics = [#tpu.dimension_semantics<parallel>, #tpu.dimension_semantics<arbitrary>], iteration_bounds = array<i64: 1, 1>, scalar_prefetch = 0 : i64, scratch_operands = 0 : i64, tpu.core_type = #tpu.core_type<tc>, window_params = [{transform_indices = @transform_0, window_bounds = array<i64: 16, 128>}, {transform_indices = @transform_1, window_bounds = array<i64: 128, 128>}, {transform_indices = @transform_2, window_bounds = array<i64: 1, 128>}, {transform_indices = @transform_3, window_bounds = array<i64: 128, 128>}, {pipeline_mode = #tpu.pipeline_mode<synchronous>, transform_indices = @transform_4, window_bounds = array<i64: 1, 128>}, {transform_indices = @transform_5, window_bounds = array<i64: 16, 128>}]} {
    %c0_i32 = arith.constant 0 : i32
    %0 = arith.cmpi eq, %arg1, %c0_i32 : i32
    %1 = arith.extui %0 : i1 to i32
    %c0_i32_0 = arith.constant 0 : i32
    %2 = arith.cmpi ne, %1, %c0_i32_0 : i32
    scf.if %2 {
      %c0_14 = arith.constant 0 : index
      %c0_15 = arith.constant 0 : index
      %16 = vector.load %arg6[%c0_14, %c0_15] : memref<1x128xf32, #tpu.memory_space<vmem>>, vector<1x128xf32>
      %17 = vector.shape_cast %16 : vector<1x128xf32> to vector<1x128xf32>
      %18 = vector.broadcast %17 : vector<1x128xf32> to vector<16x128xf32>
      %c0_16 = arith.constant 0 : index
      %c0_17 = arith.constant 0 : index
      %19 = vector.load %arg7[%c0_16, %c0_17] : memref<16x128xf32, #tpu.memory_space<vmem>>, vector<16x128xf32>
      tpu.vector_store %arg7[%c0_16, %c0_17], %18 {strides = array<i32>} : memref<16x128xf32, #tpu.memory_space<vmem>>, vector<16x128xf32>,
    } else {
    }
    %c0 = arith.constant 0 : index
    %c0_1 = arith.constant 0 : index
    %3 = vector.load %arg2[%c0, %c0_1] : memref<16x128xf32, #tpu.memory_space<vmem>>, vector<16x128xf32>
    %c0_2 = arith.constant 0 : index
    %c0_3 = arith.constant 0 : index
    %4 = vector.load %arg3[%c0_2, %c0_3] : memref<128x128xf32, #tpu.memory_space<vmem>>, vector<128x128xf32>
    %cst = arith.constant dense<0.000000e+00> : vector<16x128xf32>
    %5 = tpu.matmul %3, %4, %cst {dimension_numbers = #tpu.dot_dimension_numbers<[1], [0], [0], [1], [0, 0, 1, 1], [], []>} : vector<16x128xf32>, vector<128x128xf32>, vector<16x128xf32> -> vector<16x128xf32>
    %c0_4 = arith.constant 0 : index
    %c0_5 = arith.constant 0 : index
    %6 = vector.load %arg4[%c0_4, %c0_5] : memref<1x128xf32, #tpu.memory_space<vmem>>, vector<1x128xf32>
    %7 = vector.broadcast %6 : vector<1x128xf32> to vector<16x128xf32>
    %8 = arith.addf %5, %7 : vector<16x128xf32>
    %cst_6 = arith.constant 0.000000e+00 : f32
    %9 = vector.broadcast %cst_6 : f32 to vector<16x128xf32>
    %10 = arith.maximumf %8, %9 : vector<16x128xf32>
    %c0_7 = arith.constant 0 : index
    %c0_8 = arith.constant 0 : index
    %11 = vector.load %arg7[%c0_7, %c0_8] : memref<16x128xf32, #tpu.memory_space<vmem>>, vector<16x128xf32>
    %c0_9 = arith.constant 0 : index
    %c0_10 = arith.constant 0 : index
    %12 = vector.load %arg5[%c0_9, %c0_10] : memref<128x128xf32, #tpu.memory_space<vmem>>, vector<128x128xf32>
    %cst_11 = arith.constant dense<0.000000e+00> : vector<16x128xf32>
    %13 = tpu.matmul %10, %12, %cst_11 {dimension_numbers = #tpu.dot_dimension_numbers<[1], [0], [0], [1], [0, 0, 1, 1], [], []>} : vector<16x128xf32>, vector<128x128xf32>, vector<16x128xf32> -> vector<16x128xf32>
    %14 = arith.addf %11, %13 : vector<16x128xf32>
    %c0_12 = arith.constant 0 : index
    %c0_13 = arith.constant 0 : index
    %15 = vector.load %arg7[%c0_12, %c0_13] : memref<16x128xf32, #tpu.memory_space<vmem>>, vector<16x128xf32>
    tpu.vector_store %arg7[%c0_12, %c0_13], %14 {strides = array<i32>} : memref<16x128xf32, #tpu.memory_space<vmem>>, vector<16x128xf32>,
    return
  }
  func.func @transform_0(%arg0: i32, %arg1: i32) -> (i32, i32) {
    %c0_i32 = arith.constant 0 : i32
    %c0_i32_0 = arith.constant 0 : i32
    return %arg0, %c0_i32 : i32, i32
  }
  func.func @transform_1(%arg0: i32, %arg1: i32) -> (i32, i32) {
    %c0_i32 = arith.constant 0 : i32
    %c0_i32_0 = arith.constant 0 : i32
    return %c0_i32, %arg1 : i32, i32
  }
  func.func @transform_2(%arg0: i32, %arg1: i32) -> (i32, i32) {
    %c0_i32 = arith.constant 0 : i32
    %c0_i32_0 = arith.constant 0 : i32
    return %c0_i32, %arg1 : i32, i32
  }
  func.func @transform_3(%arg0: i32, %arg1: i32) -> (i32, i32) {
    %c0_i32 = arith.constant 0 : i32
    %c0_i32_0 = arith.constant 0 : i32
    return %arg1, %c0_i32 : i32, i32
  }
  func.func @transform_4(%arg0: i32, %arg1: i32) -> (i32, i32) {
    %c0_i32 = arith.constant 0 : i32
    %c0_i32_0 = arith.constant 0 : i32
    %c0_i32_1 = arith.constant 0 : i32
    return %c0_i32, %c0_i32_0 : i32, i32
  }
  func.func @transform_5(%arg0: i32, %arg1: i32) -> (i32, i32) {
    %c0_i32 = arith.constant 0 : i32
    %c0_i32_0 = arith.constant 0 : i32
    return %arg0, %c0_i32 : i32, i32
  }
}

</mosaic_0001>

<bundles_post_ra>
// kernel: ffn_pallas.1
= control target key start
LH: loop header
LB: loop body
LE: loop exit
PB: predicated region body
PF: predicated region fallthrough
CT: control target
= control target key end

     0   :  { %s552_s1 = inlined_call_operand.vmem [shape: f32[128,128], index: 1, kind: input, shape index: {}]   ;;  %s553_s0 = inlined_call_operand.vmem [shape: f32[16,128], index: 0, kind: input, shape index: {}]   ;;  %s554_s3 = inlined_call_operand.vmem [shape: f32[128,128], index: 3, kind: input, shape index: {}]   ;;  %s555_s2 = inlined_call_operand.vmem [shape: f32[1,128], index: 2, kind: input, shape index: {}]   ;;  %s556_s4 = inlined_call_operand.vmem [shape: f32[1,128], index: 4, kind: input, shape index: {}]   ;;  %s557_s5 = inlined_call_operand.vmem [shape: f32[16,128], index: 5, kind: output, shape index: {}]  }
   0x1   :  { %v35_v0 = vld [vmem:[%s552_s1] sm:$0xff]  ;;  %v36_v1 = vld [vmem:[%s552_s1 + $0x8] sm:$0xff]  ;;  %v37_v2 = vld [vmem:[%s552_s1 + $0x10] sm:$0xff] }
   0x2   :  { %v344_v3 = vpack.c.bf16 %v36_v1, %v35_v0  ;;  %v38_v4 = vld [vmem:[%s552_s1 + $0x18] sm:$0xff]  ;;  %v39_v6 = vld [vmem:[%s552_s1 + $0x20] sm:$0xff]  ;;  %v40_v7 = vld [vmem:[%s552_s1 + $0x28] sm:$0xff] }
   0x3   :  { %v348_v5 = vpack.c.bf16 %v38_v4, %v37_v2  ;;  %v352_v8 = vpack.c.bf16 %v40_v7, %v39_v6  ;;  %v41_v9 = vld [vmem:[%s552_s1 + $0x30] sm:$0xff]  ;;  %v42_v10 = vld [vmem:[%s552_s1 + $0x38] sm:$0xff]  ;;  %v33_v11 = vld [vmem:[%s553_s0] sm:$0xff] }
   0x4   :  { %345 = vmatprep.subr.bf16.mxu0 %v344_v3  ;;  %306 = vmatprep.mubr.f32.mxu0 %v33_v11  ;;  %v137_v12 = vld [vmem:[%s554_s3] sm:$0xff]  ;;  %v138_v13 = vld [vmem:[%s554_s3 + $0x8] sm:$0xff]  ;;  %v139_v14 = vld [vmem:[%s554_s3 + $0x10] sm:$0xff]  ;;  %v356_v20 = vpack.c.bf16 %v42_v10, %v41_v9 }
   0x5   :  { %347 = vmatpush3.bf16.msra.mxu0 %v344_v3  ;;  %v376_v15 = vpack.c.bf16 %v138_v13, %v137_v12  ;;  %v140_v16 = vld [vmem:[%s554_s3 + $0x18] sm:$0xff]  ;;  %v141_v18 = vld [vmem:[%s554_s3 + $0x20] sm:$0xff]  ;;  %v142_v19 = vld [vmem:[%s554_s3 + $0x28] sm:$0xff] }
   0x6   :  { %349 = vmatprep.subr.bf16.mxu0 %v348_v5  ;;  %v380_v17 = vpack.c.bf16 %v140_v16, %v139_v14  ;;  %v43_v21 = vld [vmem:[%s552_s1 + $0x40] sm:$0xff]  ;;  %v44_v22 = vld [vmem:[%s552_s1 + $0x48] sm:$0xff]  ;;  %v384_v23 = vpack.c.bf16 %v142_v19, %v141_v18  ;;  %v143_v24 = vld [vmem:[%s554_s3 + $0x30] sm:$0xff] }
   0x7   :  { %377 = vmatprep.subr.bf16.mxu1 %v376_v15  ;;  %v144_v25 = vld [vmem:[%s554_s3 + $0x38] sm:$0xff]  ;;  %v360_v26 = vpack.c.bf16 %v44_v22, %v43_v21  ;;  %v45_v27 = vld [vmem:[%s552_s1 + $0x50] sm:$0xff]  ;;  %v145_v30 = vld [vmem:[%s554_s3 + $0x40] sm:$0xff] }
   0x8   :  { %379 = vmatpush3.bf16.msra.mxu1 %v376_v15  ;;  %v46_v28 = vld [vmem:[%s552_s1 + $0x58] sm:$0xff]  ;;  %v388_v29 = vpack.c.bf16 %v144_v25, %v143_v24  ;;  %v146_v31 = vld [vmem:[%s554_s3 + $0x48] sm:$0xff]  ;;  %v47_v33 = vld [vmem:[%s552_s1 + $0x60] sm:$0xff] }
   0x9   :  { %351 = vmatpush3.bf16.msra.mxu0 %v348_v5  ;;  %381 = vmatprep.subr.bf16.mxu1 %v380_v17  ;;  %v364_v32 = vpack.c.bf16 %v46_v28, %v45_v27  ;;  %v48_v34 = vld [vmem:[%s552_s1 + $0x68] sm:$0xff]  ;;  %v392_v35 = vpack.c.bf16 %v146_v31, %v145_v30  ;;  %v147_v36 = vld [vmem:[%s554_s3 + $0x50] sm:$0xff]  ;;  %v148_v37 = vld [vmem:[%s554_s3 + $0x58] sm:$0xff] }
   0xa   :  { %353 = vmatprep.subr.bf16.mxu0 %v352_v8  ;;  %v368_v38 = vpack.c.bf16 %v48_v34, %v47_v33  ;;  %v49_v39 = vld [vmem:[%s552_s1 + $0x70] sm:$0xff]  ;;  %v50_v40 = vld [vmem:[%s552_s1 + $0x78] sm:$0xff]  ;;  %v396_v41 = vpack.c.bf16 %v148_v37, %v147_v36  ;;  %v149_v42 = vld [vmem:[%s554_s3 + $0x60] sm:$0xff] }
   0xb   :  { %v150_v43 = vld [vmem:[%s554_s3 + $0x68] sm:$0xff]  ;;  %v372_v44 = vpack.c.bf16 %v50_v40, %v49_v39  ;;  %v151_v47 = vld [vmem:[%s554_s3 + $0x70] sm:$0xff]  ;;  %v152_v48 = vld [vmem:[%s554_s3 + $0x78] sm:$0xff] }
   0xc   :  { %383 = vmatpush3.bf16.msra.mxu1 %v380_v17  ;;  %v400_v45 = vpack.c.bf16 %v150_v43, %v149_v42  ;;  %v34_v46 = vld [vmem:[%s553_s0 + $0x8] sm:$0xff]  ;;  %v404_v49 = vpack.c.bf16 %v152_v48, %v151_v47  ;;  %v237_v50 = vld [vmem:[%s555_s2] ss:$0 sm:$0xff] }
   0xd   :  { %355 = vmatpush3.bf16.msra.mxu0 %v352_v8  ;;  %385 = vmatprep.subr.bf16.mxu1 %v384_v23  ;;  %v236_v57 = vld [vmem:[%s556_s4] ss:$0 sm:$0xff] }
   0xe   :  { %357 = vmatprep.subr.bf16.mxu0 %v356_v20 }
  0x10   :  { %387 = vmatpush3.bf16.msra.mxu1 %v384_v23 }
  0x11   :  { %359 = vmatpush3.bf16.msra.mxu0 %v356_v20  ;;  %389 = vmatprep.subr.bf16.mxu1 %v388_v29 }
  0x12   :  { %361 = vmatprep.subr.bf16.mxu0 %v360_v26 }
  0x14   :  { %391 = vmatpush3.bf16.msra.mxu1 %v388_v29 }
  0x15   :  { %363 = vmatpush3.bf16.msra.mxu0 %v360_v26  ;;  %393 = vmatprep.subr.bf16.mxu1 %v392_v35 }
  0x16   :  { %365 = vmatprep.subr.bf16.mxu0 %v364_v32 }
  0x18   :  { %395 = vmatpush3.bf16.msra.mxu1 %v392_v35 }
  0x19   :  { %367 = vmatpush3.bf16.msra.mxu0 %v364_v32  ;;  %397 = vmatprep.subr.bf16.mxu1 %v396_v41 }
  0x1a   :  { %369 = vmatprep.subr.bf16.mxu0 %v368_v38 }
  0x1c   :  { %399 = vmatpush3.bf16.msra.mxu1 %v396_v41 }
  0x1d   :  { %371 = vmatpush3.bf16.msra.mxu0 %v368_v38  ;;  %401 = vmatprep.subr.bf16.mxu1 %v400_v45 }
  0x1e   :  { %373 = vmatprep.subr.bf16.mxu0 %v372_v44 }
  0x20   :  { %403 = vmatpush3.bf16.msra.mxu1 %v400_v45 }
  0x21   :  { %375 = vmatpush3.bf16.msra.mxu0 %v372_v44  ;;  %405 = vmatprep.subr.bf16.mxu1 %v404_v49 }
  0x24   :  { %307 = vmatmul.mubr.f32.vlgmr.msra.gmra.mrb[0].mxu0 %v34_v46  ;;  %407 = vmatpush3.bf16.msra.mxu1 %v404_v49 }
  0xf7   :  { %v308_v51 = vpop.f32.mrb[0].mxu0 }
  0xf8   :  { %v130_v52 = vadd.f32 %v308_v51, %v237_v50  ;;  %v124_v53 = vpop.f32.mrb[1].mxu0 }
  0xf9   :  { %v125_v54 = vadd.f32 %v237_v50, %v124_v53 }
  0xfa   :  { %v134_v56 = vmax.f32 %v130_v52, 0.0 }
  0xfb   :  { %v133_v55 = vmax.f32 %v125_v54, 0.0 }
  0xfd   :  { %341 = vmatprep.mubr.f32.mxu1 %v133_v55 }
  0xfe   :  { %342 = vmatmul.mubr.f32.vlgmr.msra.gmra.mrb[0].mxu1 %v134_v56 }
 0x1d1   :  { %v343_v58 = vpop.f32.mrb[0].mxu1 }
 0x1d2   :  { %v229_v59 = vadd.f32 %v343_v58, %v236_v57  ;;  %v219_v60 = vpop.f32.mrb[1].mxu1 }
 0x1d3   :  { %v228_v61 = vadd.f32 %v236_v57, %v219_v60 }
 0x1d4   :  { %231 = vst [vmem:[%s557_s5 + $0x8] sm:$0xff] %v229_v59 }
 0x1d5   :  { %230 = vst [vmem:[%s557_s5] sm:$0xff] %v228_v61 }

</bundles_post_ra>
